<compile_context>
chip_gen: v6e
topology: v6e:2x2x1
jax: 0.10.0
libtpu: 0.0.40
codegen_flags: <defaults>
</compile_context>

<pallas_src>
import jax
import jax.numpy as jnp
from jax import lax
from jax.experimental import pallas as pl
from jax.experimental.pallas import tpu as pltpu


# -----------------------------------------------------------------------------
# Fused kernel factory
# -----------------------------------------------------------------------------
def _make_fused_residual_block_kernel(R, H, W, eps):
    """R = (padded) rows per step, each row = one (sample, channel) image plane
    flattened to HW lanes."""
    HW = H * W
    if W & (W - 1):
        # TODO(synk): generalize the in-row index to non-power-of-two W (modulo mask).
        raise ValueError("W must be a power of two for the lane-index masks")

    def kernel(x_ref, w1_ref, b1_ref, w2_ref, b2_ref, o_ref):
        xv = x_ref[0]  # (R, HW) float32, lane-dense

        # Boundary masks for in-kernel reflection padding: a single (1, HW) iota
        # row, broadcast over all rows by the selects below.
        lane = lax.broadcasted_iota(jnp.int32, (1, HW), 1)
        w_in_row = lane & (W - 1)
        is_w0 = w_in_row == 0
        is_wl = w_in_row == (W - 1)
        is_h0 = lane < W            # first image row
        is_hl = lane >= HW - W      # last image row
        inv_hw = jnp.float32(1.0 / HW)

        def roll_l(v, s):
            # circular lane shift: out[..., i] = v[..., (i - s) mod HW]
            return pltpu.roll(v, shift=s % HW, axis=1)

        def im2col_reflect(v):
            """The 9 reflection-padded 3x3 shift-windows of v (R, HW), stacked to
            (9*R, HW) with patch-row index = (di*3 + dj)*R + r.  Each window is an
            8-sublane-aligned piece, so the concat is a straight copy."""
            up = roll_l(v, W)      # value of row h-1
            down = roll_l(v, -W)   # value of row h+1
            rows = (
                jnp.where(is_h0, down, up),    # di = 0: row h-1, reflect at h = 0
                v,                             # di = 1
                jnp.where(is_hl, up, down),    # di = 2: row h+1, reflect at h = H-1
            )
            wins = []
            for r in rows:
                left = roll_l(r, 1)            # value of column w-1
                right = roll_l(r, -1)          # value of column w+1
                wins.append(jnp.where(is_w0, right, left))   # dj = 0
                wins.append(r)                               # dj = 1
                wins.append(jnp.where(is_wl, left, right))   # dj = 2
            return jnp.concatenate(wins, axis=0)             # (9*R, HW)

        def conv3x3_instance_norm(v, w_ref, b_ref, relu):
            patches = im2col_reflect(v)
            # One MXU matmul for the whole conv (block-diag weight keeps samples
            # separate).  Operands may be bf16 (w_ref's dtype); accumulate in f32.
            y = jnp.dot(w_ref[...], patches.astype(w_ref.dtype),
                        preferred_element_type=jnp.float32) + b_ref[...]  # (R, HW)
            # InstanceNorm2d (no affine): per-row stats over the HW lanes.
            mean = jnp.sum(y, axis=1, keepdims=True) * inv_hw
            ex2 = jnp.sum(y * y, axis=1, keepdims=True) * inv_hw
            var = jnp.maximum(ex2 - mean * mean, 0.0)
            y = (y - mean) * lax.rsqrt(var + eps)
            return jnp.maximum(y, 0.0) if relu else y

        h1 = conv3x3_instance_norm(xv, w1_ref, b1_ref, relu=True)
        h2 = conv3x3_instance_norm(h1, w2_ref, b2_ref, relu=False)
        o_ref[0] = (h2 + xv).astype(o_ref.dtype)   # residual add, lane-dense store

    return kernel


# -----------------------------------------------------------------------------
# Wrapper (layout plumbing only: free reshapes + block-diag weight flattening)
# -----------------------------------------------------------------------------
def residual_block_forward(x, w1, b1, w2, b2, eps=1e-5, matmul_dtype=jnp.float32):
    """ResidualBlock.forward (InstanceNorm branch: s_dim/h_dim = None)."""
    B, C, H, W = x.shape
    HW = H * W

    # Samples per grid step: fill >= 8 sublanes with real data (B_blk*C >= 8) while
    # dividing the batch evenly.  With larger batches the remaining grid axis stays
    # "parallel" so both v7x TensorCores are used; on v5e/v6e (1 TC) fewer, bigger
    # steps is strictly better.
    want = max(1, -(-8 // C))
    B_blk = 1
    for d in range(1, B + 1):
        if B % d == 0 and d <= want:
            B_blk = d
    G = B // B_blk
    R0 = B_blk * C                     # real rows per step
    R = -(-R0 // 8) * 8                # pad rows to a sublane-tile multiple

    # lane-dense activations: row index = b_local*C + c, lanes = H*W (free reshape)
    x_rows = x.reshape(G, R0, HW)
    if R > R0:
        x_rows = jnp.pad(x_rows, ((0, 0), (0, R - R0), (0, 0)))

    # Flatten Conv2d weight (C, C, 3, 3) to a block-diagonal (R, 9*R) matrix with
    # K index = (di*3 + dj)*R + b*C + ci, matching the in-kernel patch ordering.
    def flat_w(w):
        taps = []
        eye = jnp.eye(B_blk, dtype=w.dtype)
        for di in range(3):
            for dj in range(3):
                blk = jnp.kron(eye, w[:, :, di, dj])          # (R0, R0)
                if R > R0:
                    blk = jnp.pad(blk, ((0, R - R0), (0, R - R0)))
                taps.append(blk)
        return jnp.concatenate(taps, axis=1).astype(matmul_dtype)  # (R, 9*R)

    def flat_b(b):
        bb = jnp.tile(b, B_blk)
        if R > R0:
            bb = jnp.pad(bb, (0, R - R0))
        return bb.reshape(R, 1).astype(jnp.float32)

    w1_mat, w2_mat = flat_w(w1), flat_w(w2)
    b1_col, b2_col = flat_b(b1), flat_b(b2)

    kernel = _make_fused_residual_block_kernel(R, H, W, eps)

    out_rows = pl.pallas_call(
        kernel,
        out_shape=jax.ShapeDtypeStruct((G, R, HW), jnp.float32),
        grid=(G,),
        in_specs=[
            pl.BlockSpec((1, R, HW), lambda g: (g, 0, 0)),   # activations, B_blk samples/step
            pl.BlockSpec((R, 9 * R), lambda g: (0, 0)),      # w1 (grid-invariant)
            pl.BlockSpec((R, 1), lambda g: (0, 0)),          # b1
            pl.BlockSpec((R, 9 * R), lambda g: (0, 0)),      # w2
            pl.BlockSpec((R, 1), lambda g: (0, 0)),          # b2
        ],
        out_specs=pl.BlockSpec((1, R, HW), lambda g: (g, 0, 0)),
        compiler_params=pltpu.CompilerParams(
            dimension_semantics=("parallel",),      # keeps both v7x TCs busy when G >= 2
            vmem_limit_bytes=32 * 1024 * 1024,      # explicit; actual use ~0.2 MiB/step
        ),
    )(x_rows, w1_mat, b1_col, w2_mat, b2_col)

    return out_rows[:, :R0].reshape(B, C, H, W)


# -----------------------------------------------------------------------------
# Parameter setup glue: spectral normalization (host-side, like torch's hook)
# -----------------------------------------------------------------------------
def spectral_normalize(w, key, n_iter=10):
    """Approximate torch spectral_norm: divide the weight by its largest singular
    value, estimated via power iteration on the (Cout, Cin*kh*kw) matrix."""
    co = w.shape[0]
    wm = w.reshape(co, -1)
    u = jax.random.normal(key, (co,), dtype=w.dtype)
    u = u / (jnp.linalg.norm(u) + 1e-12)
    v = None
    for _ in range(n_iter):
        v = wm.T @ u
        v = v / (jnp.linalg.norm(v) + 1e-12)
        u = wm @ v
        u = u / (jnp.linalg.norm(u) + 1e-12)
    sigma = u @ (wm @ v)
    return w / sigma


# -----------------------------------------------------------------------------
# Pure-JAX reference (for the correctness check)
# -----------------------------------------------------------------------------
def _ref_forward(x, w1, b1, w2, b2, eps=1e-5):
    def conv(inp, w, b):
        padded = jnp.pad(inp, ((0, 0), (0, 0), (1, 1), (1, 1)), mode="reflect")
        y = lax.conv_general_dilated(
            padded, w, window_strides=(1, 1), padding="VALID",
            dimension_numbers=("NCHW", "OIHW", "NCHW"))
        return y + b[None, :, None, None]

    def inorm(y):
        m = jnp.mean(y, axis=(2, 3), keepdims=True)
        v = jnp.mean((y - m) ** 2, axis=(2, 3), keepdims=True)
        return (y - m) * lax.rsqrt(v + eps)

    h = jnp.maximum(inorm(conv(x, w1, b1)), 0.0)
    return inorm(conv(h, w2, b2)) + x


# -----------------------------------------------------------------------------
# main
# -----------------------------------------------------------------------------
if __name__ == "__main__":
    B, C, H, W = 2, 4, 16, 16  # small shapes consistent with the module

    key = jax.random.PRNGKey(0)
    kx, kw1, kb1, kw2, kb2, ku1, ku2 = jax.random.split(key, 7)

    x = jax.random.normal(kx, (B, C, H, W), dtype=jnp.float32)

    # synthetic Conv2d parameters: weight (C, C, 3, 3) + bias (C,)
    w1 = 0.3 * jax.random.normal(kw1, (C, C, 3, 3), dtype=jnp.float32)
    b1 = 0.1 * jax.random.normal(kb1, (C,), dtype=jnp.float32)
    w2 = 0.3 * jax.random.normal(kw2, (C, C, 3, 3), dtype=jnp.float32)
    b2 = 0.1 * jax.random.normal(kb2, (C,), dtype=jnp.float32)

    # Spectral normalization (host-side parameter preprocessing, like torch's hook).
    # TODO(synk): torch keeps a persistent `u` buffer with 1 power iteration per
    # forward; here we use a fresh u with 10 iterations as synthetic setup glue.
    w1 = spectral_normalize(w1, ku1)
    w2 = spectral_normalize(w2, ku2)

    ref = _ref_forward(x, w1, b1, w2, b2)

    # f32 MXU operands: tight check against the f32 reference.
    out = residual_block_forward(x, w1, b1, w2, b2)
    out = jax.block_until_ready(out)
    assert out.shape == (B, C, H, W)
    assert jnp.all(jnp.isfinite(out))
    assert jnp.allclose(out, ref, atol=3e-4, rtol=3e-4), (
        float(jnp.max(jnp.abs(out - ref))))

    # bf16 MXU operands (v6e/v7x fast path); all non-matmul math stays f32, so only
    # the operand rounding differs -> loose tolerance vs. the f32 reference.
    out_bf16 = residual_block_forward(x, w1, b1, w2, b2, matmul_dtype=jnp.bfloat16)
    out_bf16 = jax.block_until_ready(out_bf16)
    assert jnp.all(jnp.isfinite(out_bf16))
    assert jnp.allclose(out_bf16, ref, atol=1e-1, rtol=1e-1), (
        float(jnp.max(jnp.abs(out_bf16 - ref))))

    print("KERNEL_OK")
</pallas_src>

<mosaic_0001>
module attributes {stable_mosaic.version = 11 : i64} {
  func.func @kernel(%arg0: i32, %arg1: memref<1x8x256xf32, #tpu.memory_space<vmem>>, %arg2: memref<8x72xf32, #tpu.memory_space<vmem>>, %arg3: memref<8x1xf32, #tpu.memory_space<vmem>>, %arg4: memref<8x72xf32, #tpu.memory_space<vmem>>, %arg5: memref<8x1xf32, #tpu.memory_space<vmem>>, %arg6: memref<1x8x256xf32, #tpu.memory_space<vmem>>) attributes {dimension_semantics = [#tpu.dimension_semantics<parallel>], iteration_bounds = array<i64: 1>, scalar_prefetch = 0 : i64, scratch_operands = 0 : i64, tpu.core_type = #tpu.core_type<tc>, window_params = [{transform_indices = @transform_0, window_bounds = array<i64: 1, 8, 256>}, {pipeline_mode = #tpu.pipeline_mode<synchronous>, transform_indices = @transform_1, window_bounds = array<i64: 8, 72>}, {pipeline_mode = #tpu.pipeline_mode<synchronous>, transform_indices = @transform_2, window_bounds = array<i64: 8, 1>}, {pipeline_mode = #tpu.pipeline_mode<synchronous>, transform_indices = @transform_3, window_bounds = array<i64: 8, 72>}, {pipeline_mode = #tpu.pipeline_mode<synchronous>, transform_indices = @transform_4, window_bounds = array<i64: 8, 1>}, {transform_indices = @transform_5, window_bounds = array<i64: 1, 8, 256>}]} {
    %c0 = arith.constant 0 : index
    %c0_0 = arith.constant 0 : index
    %c0_1 = arith.constant 0 : index
    %0 = vector.load %arg1[%c0, %c0_0, %c0_1] : memref<1x8x256xf32, #tpu.memory_space<vmem>>, vector<1x8x256xf32>
    %1 = vector.shape_cast %0 : vector<1x8x256xf32> to vector<8x256xf32>
    %2 = tpu.iota {dimensions = array<i32: 1>} : vector<1x256xi32>
    %c15_i32 = arith.constant 15 : i32
    %3 = vector.broadcast %c15_i32 : i32 to vector<1x256xi32>
    %4 = arith.andi %2, %3 : vector<1x256xi32>
    %c0_i32 = arith.constant 0 : i32
    %5 = vector.broadcast %c0_i32 : i32 to vector<1x256xi32>
    %6 = arith.cmpi eq, %4, %5 : vector<1x256xi32>
    %c15_i32_2 = arith.constant 15 : i32
    %7 = vector.broadcast %c15_i32_2 : i32 to vector<1x256xi32>
    %8 = arith.cmpi eq, %4, %7 : vector<1x256xi32>
    %c16_i32 = arith.constant 16 : i32
    %9 = vector.broadcast %c16_i32 : i32 to vector<1x256xi32>
    %10 = arith.cmpi slt, %2, %9 : vector<1x256xi32>
    %c240_i32 = arith.constant 240 : i32
    %11 = vector.broadcast %c240_i32 : i32 to vector<1x256xi32>
    %12 = arith.cmpi sge, %2, %11 : vector<1x256xi32>
    %c16_i32_3 = arith.constant 16 : i32
    %13 = tpu.dynamic_rotate %1 by %c16_i32_3 dim 1 : vector<8x256xf32>, i32 -> vector<8x256xf32>
    %c240_i32_4 = arith.constant 240 : i32
    %14 = tpu.dynamic_rotate %1 by %c240_i32_4 dim 1 : vector<8x256xf32>, i32 -> vector<8x256xf32>
    %15 = vector.shape_cast %10 : vector<1x256xi1> to vector<1x256xi1>
    %16 = vector.broadcast %15 : vector<1x256xi1> to vector<8x256xi1>
    %17 = arith.select %16, %14, %13 : vector<8x256xi1>, vector<8x256xf32>
    %18 = vector.shape_cast %12 : vector<1x256xi1> to vector<1x256xi1>
    %19 = vector.broadcast %18 : vector<1x256xi1> to vector<8x256xi1>
    %20 = arith.select %19, %13, %14 : vector<8x256xi1>, vector<8x256xf32>
    %c1_i32 = arith.constant 1 : i32
    %21 = tpu.dynamic_rotate %17 by %c1_i32 dim 1 : vector<8x256xf32>, i32 -> vector<8x256xf32>
    %c255_i32 = arith.constant 255 : i32
    %22 = tpu.dynamic_rotate %17 by %c255_i32 dim 1 : vector<8x256xf32>, i32 -> vector<8x256xf32>
    %23 = vector.shape_cast %6 : vector<1x256xi1> to vector<1x256xi1>
    %24 = vector.broadcast %23 : vector<1x256xi1> to vector<8x256xi1>
    %25 = arith.select %24, %22, %21 : vector<8x256xi1>, vector<8x256xf32>
    %26 = vector.shape_cast %8 : vector<1x256xi1> to vector<1x256xi1>
    %27 = vector.broadcast %26 : vector<1x256xi1> to vector<8x256xi1>
    %28 = arith.select %27, %21, %22 : vector<8x256xi1>, vector<8x256xf32>
    %c1_i32_5 = arith.constant 1 : i32
    %29 = tpu.dynamic_rotate %1 by %c1_i32_5 dim 1 : vector<8x256xf32>, i32 -> vector<8x256xf32>
    %c255_i32_6 = arith.constant 255 : i32
    %30 = tpu.dynamic_rotate %1 by %c255_i32_6 dim 1 : vector<8x256xf32>, i32 -> vector<8x256xf32>
    %31 = vector.shape_cast %6 : vector<1x256xi1> to vector<1x256xi1>
    %32 = vector.broadcast %31 : vector<1x256xi1> to vector<8x256xi1>
    %33 = arith.select %32, %30, %29 : vector<8x256xi1>, vector<8x256xf32>
    %34 = vector.shape_cast %8 : vector<1x256xi1> to vector<1x256xi1>
    %35 = vector.broadcast %34 : vector<1x256xi1> to vector<8x256xi1>
    %36 = arith.select %35, %29, %30 : vector<8x256xi1>, vector<8x256xf32>
    %c1_i32_7 = arith.constant 1 : i32
    %37 = tpu.dynamic_rotate %20 by %c1_i32_7 dim 1 : vector<8x256xf32>, i32 -> vector<8x256xf32>
    %c255_i32_8 = arith.constant 255 : i32
    %38 = tpu.dynamic_rotate %20 by %c255_i32_8 dim 1 : vector<8x256xf32>, i32 -> vector<8x256xf32>
    %39 = vector.shape_cast %6 : vector<1x256xi1> to vector<1x256xi1>
    %40 = vector.broadcast %39 : vector<1x256xi1> to vector<8x256xi1>
    %41 = arith.select %40, %38, %37 : vector<8x256xi1>, vector<8x256xf32>
    %42 = vector.shape_cast %8 : vector<1x256xi1> to vector<1x256xi1>
    %43 = vector.broadcast %42 : vector<1x256xi1> to vector<8x256xi1>
    %44 = arith.select %43, %37, %38 : vector<8x256xi1>, vector<8x256xf32>
    %45 = tpu.concatenate %25, %17, %28, %33, %1, %36, %41, %20, %44 in 0 : vector<8x256xf32>, vector<8x256xf32>, vector<8x256xf32>, vector<8x256xf32>, vector<8x256xf32>, vector<8x256xf32>, vector<8x256xf32>, vector<8x256xf32>, vector<8x256xf32> -> vector<72x256xf32>
    %c0_9 = arith.constant 0 : index
    %c0_10 = arith.constant 0 : index
    %46 = vector.load %arg2[%c0_9, %c0_10] : memref<8x72xf32, #tpu.memory_space<vmem>>, vector<8x72xf32>
    %cst = arith.constant dense<0.000000e+00> : vector<8x256xf32>
    %47 = tpu.matmul %46, %45, %cst {dimension_numbers = #tpu.dot_dimension_numbers<[1], [0], [0], [1], [0, 0, 1, 1], [], []>} : vector<8x72xf32>, vector<72x256xf32>, vector<8x256xf32> -> vector<8x256xf32>
    %c0_11 = arith.constant 0 : index
    %c0_12 = arith.constant 0 : index
    %48 = vector.load %arg3[%c0_11, %c0_12] : memref<8x1xf32, #tpu.memory_space<vmem>>, vector<8x1xf32>
    %49 = vector.broadcast %48 : vector<8x1xf32> to vector<8x256xf32>
    %50 = arith.addf %47, %49 : vector<8x256xf32>
    %cst_13 = arith.constant dense<0.000000e+00> : vector<8xf32>
    %51 = vector.multi_reduction <add>, %50, %cst_13 [1] : vector<8x256xf32> to vector<8xf32>
    %52 = vector.shape_cast %51 : vector<8xf32> to vector<8x1xf32>
    %cst_14 = arith.constant 3.906250e-03 : f32
    %53 = vector.broadcast %cst_14 : f32 to vector<8x1xf32>
    %54 = arith.mulf %52, %53 : vector<8x1xf32>
    %55 = arith.mulf %50, %50 : vector<8x256xf32>
    %cst_15 = arith.constant dense<0.000000e+00> : vector<8xf32>
    %56 = vector.multi_reduction <add>, %55, %cst_15 [1] : vector<8x256xf32> to vector<8xf32>
    %57 = vector.shape_cast %56 : vector<8xf32> to vector<8x1xf32>
    %cst_16 = arith.constant 3.906250e-03 : f32
    %58 = vector.broadcast %cst_16 : f32 to vector<8x1xf32>
    %59 = arith.mulf %57, %58 : vector<8x1xf32>
    %60 = arith.mulf %54, %54 : vector<8x1xf32>
    %61 = arith.subf %59, %60 : vector<8x1xf32>
    %cst_17 = arith.constant 0.000000e+00 : f32
    %62 = vector.broadcast %cst_17 : f32 to vector<8x1xf32>
    %63 = arith.maximumf %61, %62 : vector<8x1xf32>
    %64 = vector.broadcast %54 : vector<8x1xf32> to vector<8x256xf32>
    %65 = arith.subf %50, %64 : vector<8x256xf32>
    %cst_18 = arith.constant 9.99999974E-6 : f32
    %66 = vector.broadcast %cst_18 : f32 to vector<8x1xf32>
    %67 = arith.addf %63, %66 : vector<8x1xf32>
    %68 = math.rsqrt %67 : vector<8x1xf32>
    %69 = vector.broadcast %68 : vector<8x1xf32> to vector<8x256xf32>
    %70 = arith.mulf %65, %69 : vector<8x256xf32>
    %cst_19 = arith.constant 0.000000e+00 : f32
    %71 = vector.broadcast %cst_19 : f32 to vector<8x256xf32>
    %72 = arith.maximumf %70, %71 : vector<8x256xf32>
    %c16_i32_20 = arith.constant 16 : i32
    %73 = tpu.dynamic_rotate %72 by %c16_i32_20 dim 1 : vector<8x256xf32>, i32 -> vector<8x256xf32>
    %c240_i32_21 = arith.constant 240 : i32
    %74 = tpu.dynamic_rotate %72 by %c240_i32_21 dim 1 : vector<8x256xf32>, i32 -> vector<8x256xf32>
    %75 = vector.shape_cast %10 : vector<1x256xi1> to vector<1x256xi1>
    %76 = vector.broadcast %75 : vector<1x256xi1> to vector<8x256xi1>
    %77 = arith.select %76, %74, %73 : vector<8x256xi1>, vector<8x256xf32>
    %78 = vector.shape_cast %12 : vector<1x256xi1> to vector<1x256xi1>
    %79 = vector.broadcast %78 : vector<1x256xi1> to vector<8x256xi1>
    %80 = arith.select %79, %73, %74 : vector<8x256xi1>, vector<8x256xf32>
    %c1_i32_22 = arith.constant 1 : i32
    %81 = tpu.dynamic_rotate %77 by %c1_i32_22 dim 1 : vector<8x256xf32>, i32 -> vector<8x256xf32>
    %c255_i32_23 = arith.constant 255 : i32
    %82 = tpu.dynamic_rotate %77 by %c255_i32_23 dim 1 : vector<8x256xf32>, i32 -> vector<8x256xf32>
    %83 = vector.shape_cast %6 : vector<1x256xi1> to vector<1x256xi1>
    %84 = vector.broadcast %83 : vector<1x256xi1> to vector<8x256xi1>
    %85 = arith.select %84, %82, %81 : vector<8x256xi1>, vector<8x256xf32>
    %86 = vector.shape_cast %8 : vector<1x256xi1> to vector<1x256xi1>
    %87 = vector.broadcast %86 : vector<1x256xi1> to vector<8x256xi1>
    %88 = arith.select %87, %81, %82 : vector<8x256xi1>, vector<8x256xf32>
    %c1_i32_24 = arith.constant 1 : i32
    %89 = tpu.dynamic_rotate %72 by %c1_i32_24 dim 1 : vector<8x256xf32>, i32 -> vector<8x256xf32>
    %c255_i32_25 = arith.constant 255 : i32
    %90 = tpu.dynamic_rotate %72 by %c255_i32_25 dim 1 : vector<8x256xf32>, i32 -> vector<8x256xf32>
    %91 = vector.shape_cast %6 : vector<1x256xi1> to vector<1x256xi1>
    %92 = vector.broadcast %91 : vector<1x256xi1> to vector<8x256xi1>
    %93 = arith.select %92, %90, %89 : vector<8x256xi1>, vector<8x256xf32>
    %94 = vector.shape_cast %8 : vector<1x256xi1> to vector<1x256xi1>
    %95 = vector.broadcast %94 : vector<1x256xi1> to vector<8x256xi1>
    %96 = arith.select %95, %89, %90 : vector<8x256xi1>, vector<8x256xf32>
    %c1_i32_26 = arith.constant 1 : i32
    %97 = tpu.dynamic_rotate %80 by %c1_i32_26 dim 1 : vector<8x256xf32>, i32 -> vector<8x256xf32>
    %c255_i32_27 = arith.constant 255 : i32
    %98 = tpu.dynamic_rotate %80 by %c255_i32_27 dim 1 : vector<8x256xf32>, i32 -> vector<8x256xf32>
    %99 = vector.shape_cast %6 : vector<1x256xi1> to vector<1x256xi1>
    %100 = vector.broadcast %99 : vector<1x256xi1> to vector<8x256xi1>
    %101 = arith.select %100, %98, %97 : vector<8x256xi1>, vector<8x256xf32>
    %102 = vector.shape_cast %8 : vector<1x256xi1> to vector<1x256xi1>
    %103 = vector.broadcast %102 : vector<1x256xi1> to vector<8x256xi1>
    %104 = arith.select %103, %97, %98 : vector<8x256xi1>, vector<8x256xf32>
    %105 = tpu.concatenate %85, %77, %88, %93, %72, %96, %101, %80, %104 in 0 : vector<8x256xf32>, vector<8x256xf32>, vector<8x256xf32>, vector<8x256xf32>, vector<8x256xf32>, vector<8x256xf32>, vector<8x256xf32>, vector<8x256xf32>, vector<8x256xf32> -> vector<72x256xf32>
    %c0_28 = arith.constant 0 : index
    %c0_29 = arith.constant 0 : index
    %106 = vector.load %arg4[%c0_28, %c0_29] : memref<8x72xf32, #tpu.memory_space<vmem>>, vector<8x72xf32>
    %cst_30 = arith.constant dense<0.000000e+00> : vector<8x256xf32>
    %107 = tpu.matmul %106, %105, %cst_30 {dimension_numbers = #tpu.dot_dimension_numbers<[1], [0], [0], [1], [0, 0, 1, 1], [], []>} : vector<8x72xf32>, vector<72x256xf32>, vector<8x256xf32> -> vector<8x256xf32>
    %c0_31 = arith.constant 0 : index
    %c0_32 = arith.constant 0 : index
    %108 = vector.load %arg5[%c0_31, %c0_32] : memref<8x1xf32, #tpu.memory_space<vmem>>, vector<8x1xf32>
    %109 = vector.broadcast %108 : vector<8x1xf32> to vector<8x256xf32>
    %110 = arith.addf %107, %109 : vector<8x256xf32>
    %cst_33 = arith.constant dense<0.000000e+00> : vector<8xf32>
    %111 = vector.multi_reduction <add>, %110, %cst_33 [1] : vector<8x256xf32> to vector<8xf32>
    %112 = vector.shape_cast %111 : vector<8xf32> to vector<8x1xf32>
    %cst_34 = arith.constant 3.906250e-03 : f32
    %113 = vector.broadcast %cst_34 : f32 to vector<8x1xf32>
    %114 = arith.mulf %112, %113 : vector<8x1xf32>
    %115 = arith.mulf %110, %110 : vector<8x256xf32>
    %cst_35 = arith.constant dense<0.000000e+00> : vector<8xf32>
    %116 = vector.multi_reduction <add>, %115, %cst_35 [1] : vector<8x256xf32> to vector<8xf32>
    %117 = vector.shape_cast %116 : vector<8xf32> to vector<8x1xf32>
    %cst_36 = arith.constant 3.906250e-03 : f32
    %118 = vector.broadcast %cst_36 : f32 to vector<8x1xf32>
    %119 = arith.mulf %117, %118 : vector<8x1xf32>
    %120 = arith.mulf %114, %114 : vector<8x1xf32>
    %121 = arith.subf %119, %120 : vector<8x1xf32>
    %cst_37 = arith.constant 0.000000e+00 : f32
    %122 = vector.broadcast %cst_37 : f32 to vector<8x1xf32>
    %123 = arith.maximumf %121, %122 : vector<8x1xf32>
    %124 = vector.broadcast %114 : vector<8x1xf32> to vector<8x256xf32>
    %125 = arith.subf %110, %124 : vector<8x256xf32>
    %cst_38 = arith.constant 9.99999974E-6 : f32
    %126 = vector.broadcast %cst_38 : f32 to vector<8x1xf32>
    %127 = arith.addf %123, %126 : vector<8x1xf32>
    %128 = math.rsqrt %127 : vector<8x1xf32>
    %129 = vector.broadcast %128 : vector<8x1xf32> to vector<8x256xf32>
    %130 = arith.mulf %125, %129 : vector<8x256xf32>
    %131 = arith.addf %130, %1 : vector<8x256xf32>
    %c0_39 = arith.constant 0 : index
    %c0_40 = arith.constant 0 : index
    %c0_41 = arith.constant 0 : index
    %132 = vector.load %arg6[%c0_39, %c0_40, %c0_41] : memref<1x8x256xf32, #tpu.memory_space<vmem>>, vector<1x8x256xf32>
    %133 = vector.shape_cast %132 : vector<1x8x256xf32> to vector<8x256xf32>
    %134 = vector.shape_cast %131 : vector<8x256xf32> to vector<1x8x256xf32>
    tpu.vector_store %arg6[%c0_39, %c0_40, %c0_41], %134 {strides = array<i32>} : memref<1x8x256xf32, #tpu.memory_space<vmem>>, vector<1x8x256xf32>,
    return
  }
  func.func @transform_0(%arg0: i32) -> (i32, i32, i32) {
    %c0_i32 = arith.constant 0 : i32
    %c0_i32_0 = arith.constant 0 : i32
    %c0_i32_1 = arith.constant 0 : i32
    return %arg0, %c0_i32, %c0_i32_0 : i32, i32, i32
  }
  func.func @transform_1(%arg0: i32) -> (i32, i32) {
    %c0_i32 = arith.constant 0 : i32
    %c0_i32_0 = arith.constant 0 : i32
    %c0_i32_1 = arith.constant 0 : i32
    return %c0_i32, %c0_i32_0 : i32, i32
  }
  func.func @transform_2(%arg0: i32) -> (i32, i32) {
    %c0_i32 = arith.constant 0 : i32
    %c0_i32_0 = arith.constant 0 : i32
    %c0_i32_1 = arith.constant 0 : i32
    return %c0_i32, %c0_i32_0 : i32, i32
  }
  func.func @transform_3(%arg0: i32) -> (i32, i32) {
    %c0_i32 = arith.constant 0 : i32
    %c0_i32_0 = arith.constant 0 : i32
    %c0_i32_1 = arith.constant 0 : i32
    return %c0_i32, %c0_i32_0 : i32, i32
  }
  func.func @transform_4(%arg0: i32) -> (i32, i32) {
    %c0_i32 = arith.constant 0 : i32
    %c0_i32_0 = arith.constant 0 : i32
    %c0_i32_1 = arith.constant 0 : i32
    return %c0_i32, %c0_i32_0 : i32, i32
  }
  func.func @transform_5(%arg0: i32) -> (i32, i32, i32) {
    %c0_i32 = arith.constant 0 : i32
    %c0_i32_0 = arith.constant 0 : i32
    %c0_i32_1 = arith.constant 0 : i32
    return %arg0, %c0_i32, %c0_i32_0 : i32, i32, i32
  }
}

</mosaic_0001>

<bundles_post_ra>
// kernel: tpu_custom_call.1
= control target key start
LH: loop header
LB: loop body
LE: loop exit
PB: predicated region body
PF: predicated region fallthrough
CT: control target
= control target key end

     0   :  { %10 = vsyncpa [#allocation3], 0  ;;  %s787_s0 = inlined_call_operand.vmem [shape: f32[1,8,256], index: 0, kind: input, shape index: {}]   ;;  %s788_s1 = inlined_call_operand.hbm [shape: f32[8,72], index: 1, kind: input, shape index: {}]   ;;  %s789_s2 = inlined_call_operand.vmem [shape: f32[8,1], index: 2, kind: input, shape index: {}]   ;;  %s790_s3 = inlined_call_operand.hbm [shape: f32[8,72], index: 3, kind: input, shape index: {}]   ;;  %s791_s4 = inlined_call_operand.vmem [shape: f32[8,1], index: 4, kind: input, shape index: {}]   ;;  %s792_s5 = inlined_call_operand.hbm [shape: f32[1,8,256], index: 5, kind: output, shape index: {}]  }
   0x1   :  { %11 = vsyncpa [#allocation6], 0 }
   0x2   :  { %12 = vsyncpa [#allocation4], 0  ;;  %s512_s18 = smov [#allocation2]   ;;  %s513_s20 = smov [#allocation5]  }
   0x3   :  { %s21_s19 = sshll.u32 %s512_s18, 4  ;;  %s33_s21 = sshll.u32 %s513_s20, 4  ;;  %s22_s19 = int_to_ptr.vmem [resolvable:$true] %s21_s19  ;;  %s34_s21 = int_to_ptr.vmem [resolvable:$true] %s33_s21 }
   0x4   :  { %s454_s22 = scalar_lea.vmem %s22_s19, 128  ;;  %p459_p1 = scmp.lt.s32.totalorder %s22_s19, %s22_s19 }
   0x5   :  { %p455_p0 = scmp.ne.s32.totalorder %s22_s19, %s454_s22  ;;  %p460_p2 = scmp.lt.s32.totalorder %s454_s22, %s454_s22 }
   0x7   :  { %p461_p3 = por %p460_p2, %p459_p1 }
   0x9   :  { %p462_p4 = pnand %p461_p3, %p455_p0 }
   0xb   :  { %465 = shalt.err (!%p462_p4)
}
   0xc   :  { %24 = dma.hbm_to_vmem [thread:$0]  %s788_s1, 128, %s22_s19, [#allocation3]  }
   0xd   :  { %s474_s25 = scalar_lea.vmem %s34_s21, 128  ;;  %p479_p6 = scmp.lt.s32.totalorder %s34_s21, %s34_s21 }
   0xe   :  { %p475_p5 = scmp.ne.s32.totalorder %s34_s21, %s474_s25  ;;  %p480_p7 = scmp.lt.s32.totalorder %s474_s25, %s474_s25 }
  0x10   :  { %p481_p8 = por %p480_p7, %p479_p6 }
  0x12   :  { %p482_p9 = pnand %p481_p8, %p475_p5 }
  0x14   :  { %485 = shalt.err (!%p482_p9)
}
  0x15   :  { %36 = dma.hbm_to_vmem [thread:$0]  %s790_s3, 128, %s34_s21, [#allocation6]  }
  0x16   :  { %506 = dma.done.wait [#allocation3], 128  }
  0x17   :  { %507 = vsyncadd [#allocation3], 4294967168 }
  0x18   :  { %508 = dma.done.wait [#allocation6], 128  }
  0x19   :  { %509 = vsyncadd [#allocation6], 4294967168  ;;  %v560_v0 = vld [vmem:[%s787_s0] sm:$0xff]  ;;  %s514_s1 = smov 112   ;;  %s515_s30 = smov 16   ;;  %v569_v1 = vld [vmem:[%s787_s0 + $0x8] sm:$0xff]  ;;  %v47_v2 = vlaneseq }
  0x1a   :  { %66 = vrot.lane.b32.xlu1 %v560_v0, %s514_s1  ;;  %60 = vrot.lane.b32.xlu0 %v560_v0, %s515_s30  ;;  %s516_s3 = smov 1   ;;  %s517_s0 = smov 127   ;;  %v518_v15 = vmov 0.0   ;;  %v519_v16 = vmov 0   ;;  %v144_v17 = vld [vmem:[%s789_s2] sm:$0xff]  ;;  %vm150_vm9 = vcmask 588800  }
  0x1b   :  { %v579_v3 = vand.u32 127, %v47_v2  ;;  %218 = vmatprep.mubr.f32.mxu0 %v518_v15  ;;  %384 = vmatprep.mubr.f32.mxu1 %v518_v15  ;;  %v143_v59 = vld [vmem:[#allocation2] sm:$0xff] }
  0x1c   :  { %441 = vset.pattern.permute.xlu0 %v519_v16 }
  0x1d   :  { %v582_v4 = vadd.s32 128, %v579_v3  ;;  %vm70_vm0 = vcmp.lt.s32.totalorder %v579_v3, 112  ;;  %vm56_vm1 = vcmp.lt.s32.totalorder %v579_v3, 16  ;;  %v50_v22 = vand.u32 15, %v579_v3 }
  0x1e   :  { %68 = vrot.lane.b32.xlu1 %v569_v1, %s514_s1  ;;  %62 = vrot.lane.b32.xlu0 %v569_v1, %s515_s30  ;;  %vm96_vm3 = vcmp.lt.s32.totalorder %v579_v3, 127  ;;  %vm89_vm6 = vcmp.lt.s32.totalorder %v579_v3, 1 }
  0x1f   :  { %vm59_vm2 = vcmp.ge.s32.totalorder %v582_v4, 240  ;;  %v51_v20 = vand.u32 15, %v582_v4  ;;  %vm630_vm5 = vcmp.eq.s32.totalorder %v50_v22, 15  ;;  %vm651_vm8 = vcmp.eq.s32.totalorder %v50_v22, 0  ;;  %v311_v4 = vld [vmem:[%s791_s4] sm:$0xff]  ;;  %s520_s4 = smov [#allocation7]  }
  0x20   :  { %s420_s11 = sshll.u32 %s520_s4, 4  ;;  %s421_s11 = int_to_ptr.vmem [resolvable:$true] %s420_s11 }
  0x21   :  { %vm626_vm4 = vcmp.eq.s32.totalorder %v51_v20, 15  ;;  %vm647_vm7 = vcmp.eq.s32.totalorder %v51_v20, 0  ;;  %s486_s12 = scalar_lea.vmem %s421_s11, 256  ;;  %p491_p11 = scmp.lt.s32.totalorder %s421_s11, %s421_s11 }
  0x22   :  { %111 = vrot.lane.b32.xlu0 %v560_v0, %s516_s3  ;;  %113 = vrot.lane.b32.xlu1 %v569_v1, %s516_s3  ;;  %p487_p10 = scmp.ne.s32.totalorder %s421_s11, %s486_s12  ;;  %p492_p12 = scmp.lt.s32.totalorder %s486_s12, %s486_s12 }
  0x24   :  { %p493_p13 = por %p492_p12, %p491_p11 }
  0x26   :  { %p494_p0 = pnand %p493_p13, %p487_p10 }
  0x8c   :  { %v67_v5 = vpop.permute.xlu1 %66  ;;  %v61_v6 = vpop.permute.xlu0 %60 }
  0x90   :  { %v69_v7 = vpop.permute.xlu1 %68  ;;  %v63_v8 = vpop.permute.xlu0 %62 }
  0x91   :  { %v71_v9 = vsel %vm70_vm0, %v67_v5, %v69_v7  ;;  %v72_v10 = vsel %vm70_vm0, %v69_v7, %v67_v5  ;;  %v593_v11 = vsel %vm56_vm1, %v61_v6, %v63_v8  ;;  %v65_v13 = vsel %vm56_vm1, %v63_v8, %v61_v6 }
  0x92   :  { %127 = vrot.lane.b32.xlu0 %v71_v9, %s516_s3  ;;  %v84_v12 = vsel %vm59_vm2, %v593_v11, %v72_v10  ;;  %v610_v14 = vsel %vm56_vm1, %v71_v9, %v65_v13 }
  0x93   :  { %129 = vrot.lane.b32.xlu1 %v84_v12, %s516_s3 }
  0x94   :  { %v112_v18 = vpop.permute.xlu0 %111  ;;  %v114_v19 = vpop.permute.xlu1 %113 }
  0x95   :  { %v115_v41 = vsel %vm89_vm6, %v112_v18, %v114_v19  ;;  %v116_v44 = vsel %vm89_vm6, %v114_v19, %v112_v18 }
  0x96   :  { %133 = vrot.lane.b32.xlu0 %v71_v9, %s517_s0 }
  0x97   :  { %135 = vrot.lane.b32.xlu1 %v84_v12, %s517_s0 }
  0x9a   :  { %117 = vrot.lane.b32.xlu0 %v560_v0, %s517_s0 }
  0x9b   :  { %119 = vrot.lane.b32.xlu1 %v569_v1, %s517_s0 }
  0x9e   :  { %85 = vrot.lane.b32.xlu0 %v610_v14, %s516_s3 }
  0x9f   :  { %87 = vrot.lane.b32.xlu1 %v593_v11, %s516_s3 }
  0xa2   :  { %92 = vrot.lane.b32.xlu0 %v610_v14, %s517_s0 }
  0xa3   :  { %94 = vrot.lane.b32.xlu1 %v593_v11, %s517_s0 }
  0xa6   :  { %147 = vperm.xlu0 %441, %v144_v17  }
 0x104   :  { %v128_v21 = vpop.permute.xlu0 %127 }
 0x105   :  { %v130_v23 = vpop.permute.xlu1 %129 }
 0x106   :  { %v131_v28 = vsel %vm89_vm6, %v128_v21, %v130_v23  ;;  %v132_v29 = vsel %vm89_vm6, %v130_v23, %v128_v21 }
 0x108   :  { %v134_v24 = vpop.permute.xlu0 %133 }
 0x109   :  { %v136_v27 = vpop.permute.xlu1 %135 }
 0x10a   :  { %v137_v30 = vsel %vm96_vm3, %v134_v24, %v136_v27  ;;  %v138_v31 = vsel %vm96_vm3, %v136_v27, %v134_v24 }
 0x10b   :  { %v142_v32 = vsel %vm626_vm4, %v131_v28, %v138_v31  ;;  %v141_v33 = vsel %vm630_vm5, %v132_v29, %v137_v30  ;;  %v140_v40 = vsel %vm647_vm7, %v138_v31, %v131_v28  ;;  %v139_v43 = vsel %vm651_vm8, %v137_v30, %v132_v29 }
 0x10c   :  { %168 = vmatprep.subr.mxu0 %v142_v32  ;;  %v118_v35 = vpop.permute.xlu0 %117 }
 0x10d   :  { %v120_v36 = vpop.permute.xlu1 %119  ;;  %169 = vmatpush1.msra.mxu0 %v141_v33 }
 0x10e   :  { %v122_v38 = vsel %vm96_vm3, %v120_v36, %v118_v35  ;;  %170 = vmatprep.subr.mxu0 %v84_v12  ;;  %v121_v39 = vsel %vm96_vm3, %v118_v35, %v120_v36 }
 0x10f   :  { %171 = vmatpush1.msra.mxu0 %v71_v9  ;;  %v126_v46 = vsel %vm626_vm4, %v115_v41, %v122_v38  ;;  %v125_v47 = vsel %vm630_vm5, %v116_v44, %v121_v39  ;;  %v124_v50 = vsel %vm647_vm7, %v122_v38, %v115_v41  ;;  %v123_v51 = vsel %vm651_vm8, %v121_v39, %v116_v44 }
 0x110   :  { %172 = vmatprep.subr.mxu0 %v140_v40  ;;  %v86_v42 = vpop.permute.xlu0 %85 }
 0x111   :  { %v88_v45 = vpop.permute.xlu1 %87  ;;  %173 = vmatpush1.msra.mxu0 %v139_v43 }
 0x112   :  { %174 = vmatprep.subr.mxu0 %v126_v46  ;;  %v90_v52 = vsel %vm89_vm6, %v86_v42, %v88_v45  ;;  %v91_v53 = vsel %vm89_vm6, %v88_v45, %v86_v42 }
 0x113   :  { %175 = vmatpush1.msra.mxu0 %v125_v47 }
 0x114   :  { %176 = vmatprep.subr.mxu0 %v569_v1  ;;  %v93_v48 = vpop.permute.xlu0 %92 }
 0x115   :  { %v95_v49 = vpop.permute.xlu1 %94  ;;  %177 = vmatpush1.msra.mxu0 %v560_v0 }
 0x116   :  { %v97_v54 = vsel %vm96_vm3, %v93_v48, %v95_v49  ;;  %v98_v55 = vsel %vm96_vm3, %v95_v49, %v93_v48  ;;  %178 = vmatprep.subr.mxu0 %v124_v50 }
 0x117   :  { %179 = vmatpush1.msra.mxu0 %v123_v51  ;;  %v110_v56 = vsel %vm626_vm4, %v90_v52, %v98_v55  ;;  %v109_v57 = vsel %vm630_vm5, %v91_v53, %v97_v54  ;;  %v104_v58 = vsel %vm647_vm7, %v98_v55, %v90_v52  ;;  %v103_v60 = vsel %vm651_vm8, %v97_v54, %v91_v53 }
 0x118   :  { %180 = vmatprep.subr.mxu0 %v110_v56 }
 0x119   :  { %181 = vmatpush1.msra.mxu0 %v109_v57 }
 0x11a   :  { %182 = vmatprep.subr.mxu0 %v593_v11 }
 0x11b   :  { %183 = vmatpush1.msra.mxu0 %v610_v14 }
 0x11c   :  { %184 = vmatprep.subr.mxu0 %v104_v58 }
 0x11d   :  { %185 = vmatpush1.msra.mxu0 %v103_v60 }
 0x11e   :  { %430 = vmatmul.mubr.msk.f32.vlgmr.msra.gmra.mxu0 %vm150_vm9, %v143_v59 }
 0x121   :  { %v148_v61 = vpop.permute.xlu0 %147 }
 0x1de   :  { %v220_v62 = vpop.f32.mrf.mxu0 }
 0x1df   :  { %v221_v63 = vadd.f32 %v220_v62, %v148_v61 }
 0x1e0   :  { %v222_v2 = vpop.f32.mrf.mxu0 }
 0x1e1   :  { %v223_v5 = vadd.f32 %v222_v2, %v148_v61  ;;  %v229_v7 = vmul.f32 %v221_v63, %v221_v63 }
 0x1e3   :  { %v225_v6 = vadd.f32 %v223_v5, %v221_v63  ;;  %v230_v8 = vmul.f32 %v223_v5, %v223_v5 }
 0x1e5   :  { %226 = vadd.xlane.f32.xlu1 %v225_v6  ;;  %v231_v9 = vadd.f32 %v230_v8, %v229_v7 }
 0x1e7   :  { %232 = vadd.xlane.f32.xlu0 %v231_v9 }
 0x26e   :  { %v227_v10 = vpop.xlane.xlu1 %226 }
 0x26f   :  { %v228_v11 = vmul.f32 0.00390625, %v227_v10 }
 0x270   :  { %v233_v12 = vpop.xlane.xlu0 %232 }
 0x271   :  { %v234_v13 = vmul.f32 0.00390625, %v233_v12  ;;  %v235_v14 = vmul.f32 %v228_v11, %v228_v11  ;;  %v238_v18 = vsub.f32 %v221_v63, %v228_v11  ;;  %v239_v19 = vsub.f32 %v223_v5, %v228_v11 }
 0x273   :  { %v236_v15 = vsub.f32 %v234_v13, %v235_v14  ;;  %v310_v14 = vld [vmem:[#allocation5] sm:$0xff] }
 0x275   :  { %v237_v16 = vmax.f32 %v236_v15, 0.0 }
 0x277   :  { %v240_v17 = vadd.f32 1e-05, %v237_v16 }
 0x279   :  { %442 = vrsqrt.f32 %v240_v17 }
 0x286   :  { %v443_v20 = vpop.eup %442 }
 0x287   :  { %v243_v21 = vmul.f32 %v443_v20, %v239_v19  ;;  %v242_v22 = vmul.f32 %v443_v20, %v238_v18 }
 0x289   :  { %v245_v23 = vmax.f32 %v243_v21, 0.0  ;;  %v244_v24 = vmax.f32 %v242_v22, 0.0 }
 0x28b   :  { %248 = vrot.lane.b32.xlu0 %v245_v23, %s515_s30  ;;  %246 = vrot.lane.b32.xlu1 %v244_v24, %s515_s30 }
 0x28f   :  { %278 = vrot.lane.b32.xlu0 %v244_v24, %s516_s3  ;;  %252 = vrot.lane.b32.xlu1 %v244_v24, %s514_s1 }
 0x293   :  { %254 = vrot.lane.b32.xlu1 %v245_v23, %s514_s1 }
 0x297   :  { %280 = vrot.lane.b32.xlu1 %v245_v23, %s516_s3 }
 0x2fd   :  { %v247_v27 = vpop.permute.xlu1 %246  ;;  %v249_v29 = vpop.permute.xlu0 %248 }
 0x2fe   :  { %v704_v31 = vsel %vm56_vm1, %v247_v27, %v249_v29  ;;  %v251_v36 = vsel %vm56_vm1, %v249_v29, %v247_v27 }
 0x301   :  { %v253_v28 = vpop.permute.xlu1 %252  ;;  %v279_v39 = vpop.permute.xlu0 %278 }
 0x305   :  { %v255_v30 = vpop.permute.xlu1 %254 }
 0x306   :  { %v256_v32 = vsel %vm70_vm0, %v253_v28, %v255_v30  ;;  %v257_v33 = vsel %vm70_vm0, %v255_v30, %v253_v28 }
 0x307   :  { %294 = vrot.lane.b32.xlu0 %v256_v32, %s516_s3  ;;  %v261_v35 = vsel %vm59_vm2, %v704_v31, %v257_v33  ;;  %v258_v38 = vsel %vm56_vm1, %v256_v32, %v251_v36 }
 0x308   :  { %296 = vrot.lane.b32.xlu1 %v261_v35, %s516_s3 }
 0x309   :  { %v281_v40 = vpop.permute.xlu1 %280 }
 0x30a   :  { %v282_v56 = vsel %vm89_vm6, %v279_v39, %v281_v40  ;;  %v283_v59 = vsel %vm89_vm6, %v281_v40, %v279_v39 }
 0x30b   :  { %300 = vrot.lane.b32.xlu0 %v256_v32, %s517_s0 }
 0x30c   :  { %302 = vrot.lane.b32.xlu1 %v261_v35, %s517_s0 }
 0x30f   :  { %284 = vrot.lane.b32.xlu0 %v244_v24, %s517_s0 }
 0x310   :  { %286 = vrot.lane.b32.xlu1 %v245_v23, %s517_s0 }
 0x313   :  { %262 = vrot.lane.b32.xlu0 %v258_v38, %s516_s3 }
 0x314   :  { %264 = vrot.lane.b32.xlu1 %v704_v31, %s516_s3 }
 0x317   :  { %268 = vrot.lane.b32.xlu0 %v258_v38, %s517_s0 }
 0x318   :  { %270 = vrot.lane.b32.xlu1 %v704_v31, %s517_s0 }
 0x31b   :  { %314 = vperm.xlu0 %441, %v311_v4  }
 0x379   :  { %v295_v41 = vpop.permute.xlu0 %294 }
 0x37a   :  { %v297_v42 = vpop.permute.xlu1 %296 }
 0x37b   :  { %v298_v45 = vsel %vm89_vm6, %v295_v41, %v297_v42  ;;  %v299_v46 = vsel %vm89_vm6, %v297_v42, %v295_v41 }
 0x37d   :  { %v301_v43 = vpop.permute.xlu0 %300 }
 0x37e   :  { %v303_v44 = vpop.permute.xlu1 %302 }
 0x37f   :  { %v304_v47 = vsel %vm96_vm3, %v301_v43, %v303_v44  ;;  %v305_v48 = vsel %vm96_vm3, %v303_v44, %v301_v43 }
 0x380   :  { %v309_v49 = vsel %vm626_vm4, %v298_v45, %v305_v48  ;;  %v308_v50 = vsel %vm630_vm5, %v299_v46, %v304_v47  ;;  %v307_v55 = vsel %vm647_vm7, %v305_v48, %v298_v45  ;;  %v306_v58 = vsel %vm651_vm8, %v304_v47, %v299_v46 }
 0x381   :  { %v285_v51 = vpop.permute.xlu0 %284  ;;  %334 = vmatprep.subr.mxu1 %v309_v49 }
 0x382   :  { %335 = vmatpush1.msra.mxu1 %v308_v50  ;;  %v287_v52 = vpop.permute.xlu1 %286 }
 0x383   :  { %v289_v53 = vsel %vm96_vm3, %v287_v52, %v285_v51  ;;  %336 = vmatprep.subr.mxu1 %v261_v35  ;;  %v288_v54 = vsel %vm96_vm3, %v285_v51, %v287_v52 }
 0x384   :  { %337 = vmatpush1.msra.mxu1 %v256_v32  ;;  %v293_v61 = vsel %vm626_vm4, %v282_v56, %v289_v53  ;;  %v292_v62 = vsel %vm630_vm5, %v283_v59, %v288_v54  ;;  %v291_v5 = vsel %vm647_vm7, %v289_v53, %v282_v56  ;;  %v290_v6 = vsel %vm651_vm8, %v288_v54, %v283_v59 }
 0x385   :  { %v263_v57 = vpop.permute.xlu0 %262  ;;  %338 = vmatprep.subr.mxu1 %v307_v55 }
 0x386   :  { %339 = vmatpush1.msra.mxu1 %v306_v58  ;;  %v265_v60 = vpop.permute.xlu1 %264 }
 0x387   :  { %340 = vmatprep.subr.mxu1 %v293_v61  ;;  %v266_v7 = vsel %vm89_vm6, %v263_v57, %v265_v60  ;;  %v267_v8 = vsel %vm89_vm6, %v265_v60, %v263_v57 }
 0x388   :  { %341 = vmatpush1.msra.mxu1 %v292_v62 }
 0x389   :  { %v269_v63 = vpop.permute.xlu0 %268  ;;  %342 = vmatprep.subr.mxu1 %v245_v23 }
 0x38a   :  { %343 = vmatpush1.msra.mxu1 %v244_v24  ;;  %v271_v2 = vpop.permute.xlu1 %270 }
 0x38b   :  { %v272_v9 = vsel %vm96_vm3, %v269_v63, %v271_v2  ;;  %v273_v10 = vsel %vm96_vm3, %v271_v2, %v269_v63  ;;  %344 = vmatprep.subr.mxu1 %v291_v5 }
 0x38c   :  { %345 = vmatpush1.msra.mxu1 %v290_v6  ;;  %v277_v11 = vsel %vm626_vm4, %v266_v7, %v273_v10  ;;  %v276_v12 = vsel %vm630_vm5, %v267_v8, %v272_v9  ;;  %v275_v13 = vsel %vm647_vm7, %v273_v10, %v266_v7  ;;  %v274_v3 = vsel %vm651_vm8, %v272_v9, %v267_v8 }
 0x38d   :  { %346 = vmatprep.subr.mxu1 %v277_v11 }
 0x38e   :  { %347 = vmatpush1.msra.mxu1 %v276_v12 }
 0x38f   :  { %348 = vmatprep.subr.mxu1 %v704_v31 }
 0x390   :  { %349 = vmatpush1.msra.mxu1 %v258_v38 }
 0x391   :  { %350 = vmatprep.subr.mxu1 %v275_v13 }
 0x392   :  { %351 = vmatpush1.msra.mxu1 %v274_v3 }
 0x393   :  { %431 = vmatmul.mubr.msk.f32.vlgmr.msra.gmra.mxu1 %vm150_vm9, %v310_v14 }
 0x396   :  { %v315_v25 = vpop.permute.xlu0 %314 }
 0x453   :  { %v386_v15 = vpop.f32.mrf.mxu1 }
 0x454   :  { %v387_v26 = vadd.f32 %v386_v15, %v315_v25 }
 0x455   :  { %v388_v16 = vpop.f32.mrf.mxu1 }
 0x456   :  { %v389_v17 = vadd.f32 %v388_v16, %v315_v25  ;;  %v395_v19 = vmul.f32 %v387_v26, %v387_v26 }
 0x458   :  { %v391_v18 = vadd.f32 %v389_v17, %v387_v26  ;;  %v396_v20 = vmul.f32 %v389_v17, %v389_v17 }
 0x45a   :  { %392 = vadd.xlane.f32.xlu1 %v391_v18  ;;  %v397_v21 = vadd.f32 %v396_v20, %v395_v19 }
 0x45c   :  { %398 = vadd.xlane.f32.xlu0 %v397_v21 }
 0x4e3   :  { %v393_v34 = vpop.xlane.xlu1 %392 }
 0x4e4   :  { %v394_v22 = vmul.f32 0.00390625, %v393_v34 }
 0x4e5   :  { %v399_v23 = vpop.xlane.xlu0 %398 }
 0x4e6   :  { %v400_v24 = vmul.f32 0.00390625, %v399_v23  ;;  %v401_v37 = vmul.f32 %v394_v22, %v394_v22  ;;  %v404_v30 = vsub.f32 %v387_v26, %v394_v22  ;;  %v405_v31 = vsub.f32 %v389_v17, %v394_v22 }
 0x4e8   :  { %v402_v27 = vsub.f32 %v400_v24, %v401_v37 }
 0x4ea   :  { %v403_v28 = vmax.f32 %v402_v27, 0.0 }
 0x4ec   :  { %v406_v29 = vadd.f32 1e-05, %v403_v28 }
 0x4ee   :  { %444 = vrsqrt.f32 %v406_v29 }
 0x4fb   :  { %v445_v32 = vpop.eup %444 }
 0x4fc   :  { %v408_v33 = vmul.f32 %v445_v32, %v404_v30  ;;  %v409_v35 = vmul.f32 %v445_v32, %v405_v31 }
 0x4fe   :  { %v410_v36 = vadd.f32 %v408_v33, %v560_v0  ;;  %v411_v38 = vadd.f32 %v409_v35, %v569_v1 }
 0x500   :  { %412 = vst [vmem:[#allocation7] sm:$0xff] %v410_v36  ;;  %413 = vst [vmem:[#allocation7 + $0x8] sm:$0xff] %v411_v38 }
 0x501   :  { %497 = shalt.err (!%p494_p0)
}
 0x502   :  { %423 = dma.vmem_to_hbm [thread:$0]  %s421_s11, 256, %s792_s5, [#allocation4]  }
 0x503   :  { %510 = dma.done.wait [#allocation4], 256  }
 0x504   :  { %511 = vsyncadd [#allocation4], 4294967040 }
 0x505   :  { %427 = vsyncpa [#allocation3], 1 }
 0x506   :  { %428 = vsyncpa [#allocation6], 1 }
 0x507   :  { %429 = vsyncpa [#allocation4], 1 }

</bundles_post_ra>
